<compile_context>
chip_gen: v6e
topology: v6e:2x2x1
jax: 0.10.0
libtpu: 0.0.40
codegen_flags: <defaults>
</compile_context>

<pallas_src>
import functools

import jax
import jax.numpy as jnp
from jax import lax
from jax.experimental import pallas as pl
from jax.experimental.pallas import tpu as pltpu


# --------------------------------------------------------------------------------------
# Tile selection: largest tile <= cap that evenly divides dim (prefer 128-multiples).
# --------------------------------------------------------------------------------------
def _pick_tile(dim, cap):
    if dim <= cap:
        return dim
    t = (cap // 128) * 128
    while t >= 128:
        if dim % t == 0:
            return t
        t -= 128
    return dim   # fall back to a single whole block


# --------------------------------------------------------------------------------------
# Kernel: standalone LayerNorm over the last dim (used for the final norm / tiled-k LN).
# eps matches torch default (1e-5).  All elementwise math in f32 (v5e-safe).
# --------------------------------------------------------------------------------------
def _layernorm_kernel(x_ref, g_ref, b_ref, o_ref, *, eps):
    x = x_ref[...].astype(jnp.float32)
    mu = jnp.mean(x, axis=-1, keepdims=True)
    xc = x - mu
    var = jnp.mean(xc * xc, axis=-1, keepdims=True)
    inv = lax.rsqrt(var + eps)
    y = xc * inv * g_ref[...].astype(jnp.float32) + b_ref[...].astype(jnp.float32)
    o_ref[...] = y.astype(o_ref.dtype)


def pallas_layernorm(x, gamma, beta, eps=1e-5):
    m, h = x.shape
    tm = _pick_tile(m, 1024)
    return pl.pallas_call(
        functools.partial(_layernorm_kernel, eps=eps),
        out_shape=jax.ShapeDtypeStruct((m, h), x.dtype),
        grid_spec=pltpu.PrefetchScalarGridSpec(
            num_scalar_prefetch=0,
            grid=(m // tm,),
            in_specs=[
                pl.BlockSpec((tm, h), lambda i: (i, 0)),
                pl.BlockSpec((1, h), lambda i: (0, 0)),
                pl.BlockSpec((1, h), lambda i: (0, 0)),
            ],
            out_specs=pl.BlockSpec((tm, h), lambda i: (i, 0)),
        ),
        compiler_params=pltpu.CompilerParams(dimension_semantics=("parallel",)),
    )(x, gamma.reshape(1, h), beta.reshape(1, h))


# --------------------------------------------------------------------------------------
# Kernels: tiled Linear (x @ w + b) with optional LeakyReLU.
#   * operands stay in native dtype; MXU accumulates into an f32 scratch
#   * `transpose_w=True` contracts x[.,k] with w[n,k] (tied vocab head, no emb_w.T)
#   * `_ln_linear_kernel` fuses LayerNorm(x) when the whole contraction fits one k-block
# --------------------------------------------------------------------------------------
def _dot_dims(transpose_w):
    return (((1,), (1,)), ((), ())) if transpose_w else (((1,), (0,)), ((), ()))


def _linear_kernel(x_ref, w_ref, b_ref, o_ref, acc_ref, *, activation, transpose_w):
    kk = pl.program_id(2)

    @pl.when(kk == 0)
    def _init():
        acc_ref[...] = jnp.zeros_like(acc_ref)

    acc_ref[...] += lax.dot_general(
        x_ref[...], w_ref[...], _dot_dims(transpose_w),
        preferred_element_type=jnp.float32)

    @pl.when(kk == pl.num_programs(2) - 1)
    def _finalize():
        y = acc_ref[...] + b_ref[...].astype(jnp.float32)
        if activation == "leakyrelu":
            y = jnp.where(y >= 0.0, y, 0.01 * y)   # torch LeakyReLU default slope
        o_ref[...] = y.astype(o_ref.dtype)


def _ln_linear_kernel(x_ref, w_ref, b_ref, g_ref, bt_ref, o_ref, *,
                      activation, transpose_w, eps):
    # Valid only when the x block spans the full hidden dim (k-grid == 1).
    x = x_ref[...].astype(jnp.float32)
    mu = jnp.mean(x, axis=-1, keepdims=True)
    xc = x - mu
    var = jnp.mean(xc * xc, axis=-1, keepdims=True)
    xn = (xc * lax.rsqrt(var + eps) * g_ref[...].astype(jnp.float32)
          + bt_ref[...].astype(jnp.float32))
    y = lax.dot_general(xn.astype(x_ref.dtype), w_ref[...], _dot_dims(transpose_w),
                        preferred_element_type=jnp.float32)
    y = y + b_ref[...].astype(jnp.float32)
    if activation == "leakyrelu":
        y = jnp.where(y >= 0.0, y, 0.01 * y)
    o_ref[...] = y.astype(o_ref.dtype)


def pallas_linear(x, w, b, *, activation="none", ln=None, transpose_w=False, eps=1e-5):
    m, k = x.shape
    if transpose_w:
        n, kw = w.shape
    else:
        kw, n = w.shape
    assert kw == k
    tm = _pick_tile(m, 512)
    tn = _pick_tile(n, 512)
    tk = _pick_tile(k, 1024)
    nk = k // tk
    b2 = b.reshape(1, n)

    if ln is not None and nk == 1:
        gamma, beta = ln
        if transpose_w:
            w_spec = pl.BlockSpec((tn, tk), lambda i, j: (j, 0))
        else:
            w_spec = pl.BlockSpec((tk, tn), lambda i, j: (0, j))
        return pl.pallas_call(
            functools.partial(_ln_linear_kernel, activation=activation,
                              transpose_w=transpose_w, eps=eps),
            out_shape=jax.ShapeDtypeStruct((m, n), x.dtype),
            grid_spec=pltpu.PrefetchScalarGridSpec(
                num_scalar_prefetch=0,
                grid=(m // tm, n // tn),
                in_specs=[
                    pl.BlockSpec((tm, tk), lambda i, j: (i, 0)),
                    w_spec,
                    pl.BlockSpec((1, tn), lambda i, j: (0, j)),
                    pl.BlockSpec((1, tk), lambda i, j: (0, 0)),
                    pl.BlockSpec((1, tk), lambda i, j: (0, 0)),
                ],
                out_specs=pl.BlockSpec((tm, tn), lambda i, j: (i, j)),
            ),
            compiler_params=pltpu.CompilerParams(
                dimension_semantics=("parallel", "parallel")),
        )(x, w, b2, gamma.reshape(1, k), beta.reshape(1, k))

    if ln is not None:
        # Fallback: contraction is tiled over k, so LN must be a standalone pass.
        x = pallas_layernorm(x, ln[0], ln[1], eps=eps)

    if transpose_w:
        w_spec = pl.BlockSpec((tn, tk), lambda i, j, kk: (j, kk))
    else:
        w_spec = pl.BlockSpec((tk, tn), lambda i, j, kk: (kk, j))
    return pl.pallas_call(
        functools.partial(_linear_kernel, activation=activation, transpose_w=transpose_w),
        out_shape=jax.ShapeDtypeStruct((m, n), x.dtype),
        grid_spec=pltpu.PrefetchScalarGridSpec(
            num_scalar_prefetch=0,
            grid=(m // tm, n // tn, nk),
            in_specs=[
                pl.BlockSpec((tm, tk), lambda i, j, kk: (i, kk)),
                w_spec,
                pl.BlockSpec((1, tn), lambda i, j, kk: (0, j)),
            ],
            out_specs=pl.BlockSpec((tm, tn), lambda i, j, kk: (i, j)),
            scratch_shapes=[pltpu.VMEM((tm, tn), jnp.float32)],
        ),
        compiler_params=pltpu.CompilerParams(
            dimension_semantics=("parallel", "parallel", "arbitrary")),
    )(x, w, b2)


# --------------------------------------------------------------------------------------
# Kernel: fused multi-head self-attention, one BATCH per grid step (all heads).
#   qkv block  : (1, L, 3H)   -- fused QKV projection output, no head transposes
#   bias block : (nhead, L, L) -- constant index => resident in VMEM, DMA'd once
#   kpm block  : (1, 1, L)     -- per-key padding mask (log-visibility)
#   out block  : (1, L, H)     -- lane-dense (H = nhead*dh) store
# Relative-bias head mapping replicates the PyTorch repeat_interleave quirk:
# attention row (b, h) consumes bias head (b*nhead + h) // bsz.
# --------------------------------------------------------------------------------------
def _mha_kernel(qkv_ref, bias_ref, kpm_ref, o_ref, *, nhead, dh, scale, bsz):
    bi = pl.program_id(0)
    h = nhead * dh
    qkv = qkv_ref[0]                                   # (L, 3H), native dtype (MXU operand)
    kpm = kpm_ref[0].astype(jnp.float32)               # (1, L)

    outs = []
    for hd in range(nhead):                            # static unroll over heads
        qh = qkv[:, hd * dh:(hd + 1) * dh]             # (L, dh)
        kh = qkv[:, h + hd * dh: h + (hd + 1) * dh]    # (L, dh)
        vh = qkv[:, 2 * h + hd * dh: 2 * h + (hd + 1) * dh]

        # q @ k^T without materializing a transpose (contract on dh of both).
        s = lax.dot_general(qh, kh, (((1,), (1,)), ((), ())),
                            preferred_element_type=jnp.float32) * scale   # (L, L) f32
        bias_head = (bi * nhead + hd) // bsz           # repeat_interleave quirk
        s = s + bias_ref[bias_head].astype(jnp.float32) + kpm

        mx = jnp.max(s, axis=-1, keepdims=True)
        p = jnp.exp(s - mx)
        p = p * pl.reciprocal(jnp.sum(p, axis=-1, keepdims=True), approx=True)  # EUP
        outs.append(jnp.dot(p.astype(qkv.dtype), vh,
                            preferred_element_type=jnp.float32))                # (L, dh)

    o_ref[0] = jnp.concatenate(outs, axis=-1).astype(o_ref.dtype)               # (L, H)


def pallas_mha(qkv3, head_bias, kpm, *, nhead, dh):
    b, l, three_h = qkv3.shape
    h = nhead * dh
    assert three_h == 3 * h
    scale = float(dh) ** -0.5
    return pl.pallas_call(
        functools.partial(_mha_kernel, nhead=nhead, dh=dh, scale=scale, bsz=b),
        out_shape=jax.ShapeDtypeStruct((b, l, h), qkv3.dtype),
        grid_spec=pltpu.PrefetchScalarGridSpec(
            num_scalar_prefetch=0,
            grid=(b,),
            in_specs=[
                pl.BlockSpec((1, l, three_h), lambda bi: (bi, 0, 0)),
                pl.BlockSpec((nhead, l, l), lambda bi: (0, 0, 0)),   # resident bias
                pl.BlockSpec((1, 1, l), lambda bi: (bi, 0, 0)),
            ],
            out_specs=pl.BlockSpec((1, l, h), lambda bi: (bi, 0, 0)),
        ),
        compiler_params=pltpu.CompilerParams(dimension_semantics=("parallel",)),
    )(qkv3, head_bias, kpm)


# --------------------------------------------------------------------------------------
# Full TransformerBlock forward (inference mode: dropout = identity).
# --------------------------------------------------------------------------------------
def transformer_block_forward(params, x, pos, *, nhead, pad):
    del pos  # pos_emb=False (module default): positions unused.
    b, l = x.shape
    emb_w = params["emb"]
    ntokens, h = emb_w.shape
    dh = h // nhead
    m = b * l

    # Token embedding gather (data movement glue in JAX).
    hid = emb_w[x].reshape(m, h)                                   # [B*L, H]

    # visibility(): log((x != pad)) per key; -1e30 is numerically identical to -inf
    # after softmax (exp underflows to exactly 0) and is safer in-kernel.
    kpm = jnp.where(x != pad, 0.0, -1e30).astype(jnp.float32).reshape(b, 1, l)

    # Relative-position table lookup indices (|i-j| + 256 into the 512-entry table).
    pos_ids = jnp.arange(l)
    rel_idx = jnp.abs(pos_ids[:, None] - pos_ids[None, :]) + 256   # [L, L]

    for ly in params["layers"]:
        # --- self-attention sub-block (pre-norm, LN fused into the QKV projection) ---
        qkv_w = jnp.concatenate([ly["q_w"], ly["k_w"], ly["v_w"]], axis=1)   # [H, 3H]
        qkv_b = jnp.concatenate([ly["q_b"], ly["k_b"], ly["v_b"]], axis=0)   # [3H]
        qkv = pallas_linear(hid, qkv_w, qkv_b, ln=(ly["norm_g"], ly["norm_b"]))

        # [nhead, L, L] bias built once per layer; resident in VMEM across the batch grid.
        head_bias = ly["rel_bias"][:, rel_idx]
        attn = pallas_mha(qkv.reshape(b, l, 3 * h), head_bias, kpm, nhead=nhead, dh=dh)
        src2 = hid + pallas_linear(attn.reshape(m, h), ly["out_w"], ly["out_b"])

        # --- feedforward sub-block: (LN fused into ff1) -> LeakyReLU -> Linear, residual ---
        ff = pallas_linear(src2, ly["ff1_w"], ly["ff1_b"], activation="leakyrelu",
                           ln=(ly["ff_norm_g"], ly["ff_norm_b"]))
        hid = src2 + pallas_linear(ff, ly["ff2_w"], ly["ff2_b"])

    raw = pallas_layernorm(hid, params["norm_g"], params["norm_b"])
    # Output layer tied to the embedding table: contract on H directly (no emb_w.T copy).
    logits = pallas_linear(raw, emb_w, params["out_bias"], transpose_w=True)
    return logits, raw.reshape(b, l, h)


# --------------------------------------------------------------------------------------
# Pure-JAX reference (same math, same PyTorch ordering quirks) for the correctness check.
# --------------------------------------------------------------------------------------
def _ref_forward(params, x, pos, *, nhead, pad):
    del pos
    b, l = x.shape
    emb_w = params["emb"]
    ntokens, h = emb_w.shape
    dh = h // nhead
    scale = float(dh) ** -0.5

    def ln(t, g, bb, eps=1e-5):
        mu = jnp.mean(t, axis=-1, keepdims=True)
        var = jnp.mean((t - mu) ** 2, axis=-1, keepdims=True)
        return (t - mu) / jnp.sqrt(var + eps) * g + bb

    hid = emb_w[x]                                                 # [B, L, H]
    vis = jnp.where(x != pad, 0.0, -1e30).astype(jnp.float32)      # [B, L]
    pos_ids = jnp.arange(l)
    rel_idx = jnp.abs(pos_ids[:, None] - pos_ids[None, :]) + 256

    for ly in params["layers"]:
        n = ln(hid, ly["norm_g"], ly["norm_b"])
        q = (n @ ly["q_w"] + ly["q_b"]) * scale
        k = n @ ly["k_w"] + ly["k_b"]
        v = n @ ly["v_w"] + ly["v_b"]
        q4 = q.reshape(b, l, nhead, dh).transpose(0, 2, 1, 3)
        k4 = k.reshape(b, l, nhead, dh).transpose(0, 2, 1, 3)
        v4 = v.reshape(b, l, nhead, dh).transpose(0, 2, 1, 3)
        s = jnp.einsum("bhqd,bhkd->bhqk", q4, k4)
        # torch: relative_bias.repeat_interleave(bsz, dim=0) then gather -> row r uses
        # head r // bsz while attention row r = b*nhead + h.
        rb = jnp.repeat(ly["rel_bias"], b, axis=0)                 # [nhead*B, 512]
        bias = rb[:, rel_idx].reshape(b, nhead, l, l)
        s = s + bias + vis[:, None, None, :]
        p = jax.nn.softmax(s, axis=-1)
        o = jnp.einsum("bhqk,bhkd->bhqd", p, v4)
        o = o.transpose(0, 2, 1, 3).reshape(b, l, h)
        src2 = hid + (o @ ly["out_w"] + ly["out_b"])
        nf = ln(src2, ly["ff_norm_g"], ly["ff_norm_b"])
        ff = nf @ ly["ff1_w"] + ly["ff1_b"]
        ff = jnp.where(ff >= 0.0, ff, 0.01 * ff)
        ff = ff @ ly["ff2_w"] + ly["ff2_b"]
        hid = src2 + ff

    raw = ln(hid, params["norm_g"], params["norm_b"])
    logits = raw @ emb_w.T + params["out_bias"]
    return logits.reshape(b * l, ntokens), raw


# --------------------------------------------------------------------------------------
# Parameter construction (random, deterministic). Weights stored [in, out].
# --------------------------------------------------------------------------------------
def init_params(key, *, ntokens, hidden, ffn, nhead, nlayers):
    kemb, knorm, *klayers = jax.random.split(key, 2 + nlayers)

    def dense(k, fi, fo):
        kw, kb = jax.random.split(k)
        w = jax.random.normal(kw, (fi, fo), jnp.float32) / jnp.sqrt(float(fi))
        bb = 0.01 * jax.random.normal(kb, (fo,), jnp.float32)
        return w, bb

    kn1, kn2 = jax.random.split(knorm)
    params = {
        "emb": jax.random.uniform(kemb, (ntokens, hidden), jnp.float32, -0.1, 0.1),
        "out_bias": jnp.zeros((ntokens,), jnp.float32),
        "norm_g": 1.0 + 0.05 * jax.random.normal(kn1, (hidden,), jnp.float32),
        "norm_b": 0.05 * jax.random.normal(kn2, (hidden,), jnp.float32),
        "layers": [],
    }
    for kl in klayers:
        ks = jax.random.split(kl, 12)
        qw, qb = dense(ks[0], hidden, hidden)
        kw_, kb_ = dense(ks[1], hidden, hidden)
        vw, vb = dense(ks[2], hidden, hidden)
        ow, ob = dense(ks[3], hidden, hidden)
        f1w, f1b = dense(ks[4], hidden, ffn)
        f2w, f2b = dense(ks[5], ffn, hidden)
        params["layers"].append({
            "q_w": qw, "q_b": qb, "k_w": kw_, "k_b": kb_, "v_w": vw, "v_b": vb,
            "out_w": ow, "out_b": ob,
            "ff1_w": f1w, "ff1_b": f1b, "ff2_w": f2w, "ff2_b": f2b,
            "rel_bias": 0.02 * jax.random.normal(ks[6], (nhead, 512), jnp.float32),
            "norm_g": 1.0 + 0.05 * jax.random.normal(ks[7], (hidden,), jnp.float32),
            "norm_b": 0.05 * jax.random.normal(ks[8], (hidden,), jnp.float32),
            "ff_norm_g": 1.0 + 0.05 * jax.random.normal(ks[9], (hidden,), jnp.float32),
            "ff_norm_b": 0.05 * jax.random.normal(ks[10], (hidden,), jnp.float32),
        })
    return params


if __name__ == "__main__":
    key = jax.random.PRNGKey(0)
    kparam, kx = jax.random.split(key)

    # Small demo shapes consistent with the module.
    batch, length = 2, 16
    hidden, nhead, nlayers, ntokens, pad = 128, 4, 2, 256, 0

    params = init_params(kparam, ntokens=ntokens, hidden=hidden,
                         ffn=4 * hidden, nhead=nhead, nlayers=nlayers)

    x = jax.random.randint(kx, (batch, length), 1, ntokens)
    x = x.at[:, length - 1].set(pad)            # exercise the pad-token visibility mask
    pos = jnp.broadcast_to(jnp.arange(length), (batch, length))

    logits, raw = transformer_block_forward(params, x, pos, nhead=nhead, pad=pad)
    logits = jax.block_until_ready(logits)
    raw = jax.block_until_ready(raw)

    ref_logits, ref_raw = _ref_forward(params, x, pos, nhead=nhead, pad=pad)

    assert logits.shape == (batch * length, ntokens), logits.shape
    assert raw.shape == (batch, length, hidden), raw.shape
    assert bool(jnp.all(jnp.isfinite(logits))), "non-finite logits"
    assert bool(jnp.allclose(logits, ref_logits, rtol=2e-2, atol=2e-2)), (
        float(jnp.max(jnp.abs(logits - ref_logits))))
    assert bool(jnp.allclose(raw, ref_raw, rtol=2e-2, atol=2e-2)), (
        float(jnp.max(jnp.abs(raw - ref_raw))))
    print("KERNEL_OK")
</pallas_src>

<mosaic_0001>
module attributes {stable_mosaic.version = 11 : i64} {
  func.func @_ln_linear_kernel(%arg0: i32, %arg1: i32, %arg2: memref<32x128xf32, #tpu.memory_space<vmem>>, %arg3: memref<128x384xf32, #tpu.memory_space<vmem>>, %arg4: memref<1x384xf32, #tpu.memory_space<vmem>>, %arg5: memref<1x128xf32, #tpu.memory_space<vmem>>, %arg6: memref<1x128xf32, #tpu.memory_space<vmem>>, %arg7: memref<32x384xf32, #tpu.memory_space<vmem>>) attributes {dimension_semantics = [#tpu.dimension_semantics<parallel>, #tpu.dimension_semantics<parallel>], iteration_bounds = array<i64: 1, 1>, scalar_prefetch = 0 : i64, scratch_operands = 0 : i64, tpu.core_type = #tpu.core_type<tc>, window_params = [{transform_indices = @transform_0, window_bounds = array<i64: 32, 128>}, {transform_indices = @transform_1, window_bounds = array<i64: 128, 384>}, {transform_indices = @transform_2, window_bounds = array<i64: 1, 384>}, {pipeline_mode = #tpu.pipeline_mode<synchronous>, transform_indices = @transform_3, window_bounds = array<i64: 1, 128>}, {pipeline_mode = #tpu.pipeline_mode<synchronous>, transform_indices = @transform_4, window_bounds = array<i64: 1, 128>}, {transform_indices = @transform_5, window_bounds = array<i64: 32, 384>}]} {
    %c0 = arith.constant 0 : index
    %c0_0 = arith.constant 0 : index
    %0 = vector.load %arg2[%c0, %c0_0] : memref<32x128xf32, #tpu.memory_space<vmem>>, vector<32x128xf32>
    %cst = arith.constant dense<0.000000e+00> : vector<32xf32>
    %1 = vector.multi_reduction <add>, %0, %cst [1] : vector<32x128xf32> to vector<32xf32>
    %2 = vector.shape_cast %1 : vector<32xf32> to vector<32x1xf32>
    %cst_1 = arith.constant 1.280000e+02 : f32
    %3 = vector.broadcast %cst_1 : f32 to vector<32x1xf32>
    %4 = arith.divf %2, %3 : vector<32x1xf32>
    %5 = vector.broadcast %4 : vector<32x1xf32> to vector<32x128xf32>
    %6 = arith.subf %0, %5 : vector<32x128xf32>
    %7 = arith.mulf %6, %6 : vector<32x128xf32>
    %cst_2 = arith.constant dense<0.000000e+00> : vector<32xf32>
    %8 = vector.multi_reduction <add>, %7, %cst_2 [1] : vector<32x128xf32> to vector<32xf32>
    %9 = vector.shape_cast %8 : vector<32xf32> to vector<32x1xf32>
    %cst_3 = arith.constant 1.280000e+02 : f32
    %10 = vector.broadcast %cst_3 : f32 to vector<32x1xf32>
    %11 = arith.divf %9, %10 : vector<32x1xf32>
    %cst_4 = arith.constant 9.99999974E-6 : f32
    %12 = vector.broadcast %cst_4 : f32 to vector<32x1xf32>
    %13 = arith.addf %11, %12 : vector<32x1xf32>
    %14 = math.rsqrt %13 : vector<32x1xf32>
    %15 = vector.broadcast %14 : vector<32x1xf32> to vector<32x128xf32>
    %16 = arith.mulf %6, %15 : vector<32x128xf32>
    %c0_5 = arith.constant 0 : index
    %c0_6 = arith.constant 0 : index
    %17 = vector.load %arg5[%c0_5, %c0_6] : memref<1x128xf32, #tpu.memory_space<vmem>>, vector<1x128xf32>
    %18 = vector.broadcast %17 : vector<1x128xf32> to vector<32x128xf32>
    %19 = arith.mulf %16, %18 : vector<32x128xf32>
    %c0_7 = arith.constant 0 : index
    %c0_8 = arith.constant 0 : index
    %20 = vector.load %arg6[%c0_7, %c0_8] : memref<1x128xf32, #tpu.memory_space<vmem>>, vector<1x128xf32>
    %21 = vector.broadcast %20 : vector<1x128xf32> to vector<32x128xf32>
    %22 = arith.addf %19, %21 : vector<32x128xf32>
    %c0_9 = arith.constant 0 : index
    %c0_10 = arith.constant 0 : index
    %23 = vector.load %arg3[%c0_9, %c0_10] : memref<128x384xf32, #tpu.memory_space<vmem>>, vector<128x384xf32>
    %cst_11 = arith.constant dense<0.000000e+00> : vector<32x384xf32>
    %24 = tpu.matmul %22, %23, %cst_11 {dimension_numbers = #tpu.dot_dimension_numbers<[1], [0], [0], [1], [0, 0, 1, 1], [], []>} : vector<32x128xf32>, vector<128x384xf32>, vector<32x384xf32> -> vector<32x384xf32>
    %c0_12 = arith.constant 0 : index
    %c0_13 = arith.constant 0 : index
    %25 = vector.load %arg4[%c0_12, %c0_13] : memref<1x384xf32, #tpu.memory_space<vmem>>, vector<1x384xf32>
    %26 = vector.broadcast %25 : vector<1x384xf32> to vector<32x384xf32>
    %27 = arith.addf %24, %26 : vector<32x384xf32>
    %c0_14 = arith.constant 0 : index
    %c0_15 = arith.constant 0 : index
    %28 = vector.load %arg7[%c0_14, %c0_15] : memref<32x384xf32, #tpu.memory_space<vmem>>, vector<32x384xf32>
    tpu.vector_store %arg7[%c0_14, %c0_15], %27 {strides = array<i32>} : memref<32x384xf32, #tpu.memory_space<vmem>>, vector<32x384xf32>,
    return
  }
  func.func @transform_0(%arg0: i32, %arg1: i32) -> (i32, i32) {
    %c0_i32 = arith.constant 0 : i32
    %c0_i32_0 = arith.constant 0 : i32
    return %arg0, %c0_i32 : i32, i32
  }
  func.func @transform_1(%arg0: i32, %arg1: i32) -> (i32, i32) {
    %c0_i32 = arith.constant 0 : i32
    %c0_i32_0 = arith.constant 0 : i32
    return %c0_i32, %arg1 : i32, i32
  }
  func.func @transform_2(%arg0: i32, %arg1: i32) -> (i32, i32) {
    %c0_i32 = arith.constant 0 : i32
    %c0_i32_0 = arith.constant 0 : i32
    return %c0_i32, %arg1 : i32, i32
  }
  func.func @transform_3(%arg0: i32, %arg1: i32) -> (i32, i32) {
    %c0_i32 = arith.constant 0 : i32
    %c0_i32_0 = arith.constant 0 : i32
    %c0_i32_1 = arith.constant 0 : i32
    return %c0_i32, %c0_i32_0 : i32, i32
  }
  func.func @transform_4(%arg0: i32, %arg1: i32) -> (i32, i32) {
    %c0_i32 = arith.constant 0 : i32
    %c0_i32_0 = arith.constant 0 : i32
    %c0_i32_1 = arith.constant 0 : i32
    return %c0_i32, %c0_i32_0 : i32, i32
  }
  func.func @transform_5(%arg0: i32, %arg1: i32) -> (i32, i32) {
    %c0_i32 = arith.constant 0 : i32
    return %arg0, %arg1 : i32, i32
  }
}

</mosaic_0001>

<bundles_post_ra>
// kernel: tpu_custom_call.1
= control target key start
LH: loop header
LB: loop body
LE: loop exit
PB: predicated region body
PF: predicated region fallthrough
CT: control target
= control target key end

     0   :  { %10 = vsyncpa [#allocation3], 0  ;;  %s613_s0 = inlined_call_operand.hbm [shape: f32[32,128], index: 0, kind: input, shape index: {}]   ;;  %s614_s1 = inlined_call_operand.hbm [shape: f32[128,384], index: 1, kind: input, shape index: {}]   ;;  %s615_s2 = inlined_call_operand.vmem [shape: f32[1,384], index: 2, kind: input, shape index: {}]   ;;  %s616_s3 = inlined_call_operand.vmem [shape: f32[1,128], index: 3, kind: input, shape index: {}]   ;;  %s617_s4 = inlined_call_operand.vmem [shape: f32[1,128], index: 4, kind: input, shape index: {}]   ;;  %s618_s5 = inlined_call_operand.hbm [shape: f32[32,384], index: 5, kind: output, shape index: {}]  }
   0x1   :  { %11 = vsyncpa [#allocation6], 0 }
   0x2   :  { %12 = vsyncpa [#allocation4], 0  ;;  %s531_s18 = smov [#allocation2]  }
   0x3   :  { %s18_s19 = sshll.u32 %s531_s18, 4  ;;  %s19_s19 = int_to_ptr.vmem [resolvable:$true] %s18_s19 }
   0x4   :  { %s473_s20 = scalar_lea.vmem %s19_s19, 512  ;;  %p478_p1 = scmp.lt.s32.totalorder %s19_s19, %s19_s19 }
   0x5   :  { %p474_p0 = scmp.ne.s32.totalorder %s19_s19, %s473_s20  ;;  %p479_p2 = scmp.lt.s32.totalorder %s473_s20, %s473_s20 }
   0x7   :  { %p480_p3 = por %p479_p2, %p478_p1 }
   0x9   :  { %p481_p4 = pnand %p480_p3, %p474_p0 }
   0xb   :  { %484 = shalt.err (!%p481_p4)
}
   0xc   :  { %s532_s21 = smov 128   ;;  %s533_s22 = smov 8  }
   0xd   :  { %24 = dma.hbm_to_vmem [thread:$0]  %s613_s0, 512, %s19_s19, [#allocation3], %s532_s21, %s532_s21, %s533_s22  }
   0xe   :  { %s534_s25 = smov [#allocation5]  }
   0xf   :  { %s30_s26 = sshll.u32 %s534_s25, 4  ;;  %s31_s26 = int_to_ptr.vmem [resolvable:$true] %s30_s26 }
  0x10   :  { %s493_s27 = scalar_lea.vmem %s31_s26, 6144  ;;  %p498_p6 = scmp.lt.s32.totalorder %s31_s26, %s31_s26 }
  0x11   :  { %p494_p5 = scmp.ne.s32.totalorder %s31_s26, %s493_s27  ;;  %p499_p7 = scmp.lt.s32.totalorder %s493_s27, %s493_s27 }
  0x13   :  { %p500_p8 = por %p499_p7, %p498_p6 }
  0x15   :  { %p501_p9 = pnand %p500_p8, %p494_p5 }
  0x17   :  { %504 = shalt.err (!%p501_p9)
}
  0x18   :  { %s535_s28 = smov 384   ;;  %s536_s29 = smov 24  }
  0x19   :  { %36 = dma.hbm_to_vmem [thread:$0]  %s614_s1, 6144, %s31_s26, [#allocation6], %s535_s28, %s535_s28, %s536_s29  }
  0x1a   :  { %525 = dma.done.wait [#allocation3], 512  }
  0x1b   :  { %526 = vsyncadd [#allocation3], 4294966784 }
  0x1c   :  { %527 = dma.done.wait [#allocation6], 6144  }
  0x1d   :  { %528 = vsyncadd [#allocation6], 4294961152  ;;  %v49_v0 = vld [vmem:[#allocation2] sm:$0xff]  ;;  %v51_v1 = vld [vmem:[#allocation2 + $0x10] sm:$0xff] }
  0x1e   :  { %53 = vadd.xlane.f32.xlu0 %v49_v0  ;;  %57 = vadd.xlane.f32.xlu1 %v51_v1  ;;  %v50_v2 = vld [vmem:[#allocation2 + $0x8] sm:$0xff]  ;;  %v52_v3 = vld [vmem:[#allocation2 + $0x18] sm:$0xff]  ;;  %v166_v4 = vld [vmem:[#allocation5 + $0x170] sm:$0xff] }
  0x1f   :  { %v165_v5 = vld [vmem:[#allocation5 + $0x168] sm:$0xff]  ;;  %v163_v6 = vld [vmem:[#allocation5 + $0x158] sm:$0xff]  ;;  %185 = vmatprep.subr.mxu0 %v166_v4  ;;  %v162_v7 = vld [vmem:[#allocation5 + $0x150] sm:$0xff] }
  0x20   :  { %v167_v8 = vld [vmem:[#allocation5 + $0x178] sm:$0xff]  ;;  %186 = vmatpush1.msra.mxu0 %v165_v5  ;;  %v160_v9 = vld [vmem:[#allocation5 + $0x140] sm:$0xff]  ;;  %v157_v12 = vld [vmem:[#allocation5 + $0x128] sm:$0xff] }
  0x21   :  { %411 = vmatprep.subr.mxu1 %v167_v8  ;;  %v164_v10 = vld [vmem:[#allocation5 + $0x160] sm:$0xff]  ;;  %187 = vmatprep.subr.mxu0 %v163_v6  ;;  %v159_v11 = vld [vmem:[#allocation5 + $0x138] sm:$0xff]  ;;  %v154_v30 = vld [vmem:[#allocation5 + $0x110] sm:$0xff] }
  0x22   :  { %55 = vadd.xlane.f32.xlu0 %v50_v2  ;;  %59 = vadd.xlane.f32.xlu1 %v52_v3  ;;  %v156_v13 = vld [vmem:[#allocation5 + $0x120] sm:$0xff]  ;;  %v161_v31 = vld [vmem:[#allocation5 + $0x148] sm:$0xff]  ;;  %v151_v33 = vld [vmem:[#allocation5 + $0xf8] sm:$0xff] }
  0x23   :  { %412 = vmatpush3.msra.mxu1 %v167_v8  ;;  %188 = vmatpush1.msra.mxu0 %v162_v7  ;;  %v153_v32 = vld [vmem:[#allocation5 + $0x108] sm:$0xff]  ;;  %v158_v34 = vld [vmem:[#allocation5 + $0x130] sm:$0xff]  ;;  %v148_v36 = vld [vmem:[#allocation5 + $0xe0] sm:$0xff] }
  0x24   :  { %413 = vmatprep.subr.mxu1 %v164_v10  ;;  %189 = vmatprep.subr.mxu0 %v160_v9  ;;  %v150_v35 = vld [vmem:[#allocation5 + $0xf0] sm:$0xff]  ;;  %v155_v37 = vld [vmem:[#allocation5 + $0x118] sm:$0xff]  ;;  %v145_v39 = vld [vmem:[#allocation5 + $0xc8] sm:$0xff] }
  0x25   :  { %414 = vmatpush3.msra.mxu1 %v164_v10  ;;  %190 = vmatpush1.msra.mxu0 %v159_v11  ;;  %v147_v38 = vld [vmem:[#allocation5 + $0xd8] sm:$0xff]  ;;  %v152_v40 = vld [vmem:[#allocation5 + $0x100] sm:$0xff]  ;;  %v142_v42 = vld [vmem:[#allocation5 + $0xb0] sm:$0xff] }
  0x26   :  { %191 = vmatprep.subr.mxu0 %v157_v12  ;;  %415 = vmatprep.subr.mxu1 %v161_v31  ;;  %v144_v41 = vld [vmem:[#allocation5 + $0xc0] sm:$0xff]  ;;  %v149_v43 = vld [vmem:[#allocation5 + $0xe8] sm:$0xff]  ;;  %v139_v45 = vld [vmem:[#allocation5 + $0x98] sm:$0xff] }
  0x27   :  { %192 = vmatpush1.msra.mxu0 %v156_v13  ;;  %416 = vmatpush3.msra.mxu1 %v161_v31  ;;  %v141_v44 = vld [vmem:[#allocation5 + $0xa8] sm:$0xff]  ;;  %v146_v46 = vld [vmem:[#allocation5 + $0xd0] sm:$0xff]  ;;  %v136_v48 = vld [vmem:[#allocation5 + $0x80] sm:$0xff] }
  0x28   :  { %193 = vmatprep.subr.mxu0 %v154_v30  ;;  %417 = vmatprep.subr.mxu1 %v158_v34  ;;  %v138_v47 = vld [vmem:[#allocation5 + $0x90] sm:$0xff]  ;;  %v143_v49 = vld [vmem:[#allocation5 + $0xb8] sm:$0xff]  ;;  %v133_v51 = vld [vmem:[#allocation5 + $0x68] sm:$0xff] }
  0x29   :  { %194 = vmatpush1.msra.mxu0 %v153_v32  ;;  %418 = vmatpush3.msra.mxu1 %v158_v34  ;;  %v135_v50 = vld [vmem:[#allocation5 + $0x78] sm:$0xff]  ;;  %v140_v52 = vld [vmem:[#allocation5 + $0xa0] sm:$0xff]  ;;  %v130_v54 = vld [vmem:[#allocation5 + $0x50] sm:$0xff] }
  0x2a   :  { %195 = vmatprep.subr.mxu0 %v151_v33  ;;  %419 = vmatprep.subr.mxu1 %v155_v37  ;;  %v132_v53 = vld [vmem:[#allocation5 + $0x60] sm:$0xff]  ;;  %v137_v55 = vld [vmem:[#allocation5 + $0x88] sm:$0xff]  ;;  %v127_v57 = vld [vmem:[#allocation5 + $0x38] sm:$0xff] }
  0x2b   :  { %196 = vmatpush1.msra.mxu0 %v150_v35  ;;  %420 = vmatpush3.msra.mxu1 %v155_v37  ;;  %v129_v56 = vld [vmem:[#allocation5 + $0x48] sm:$0xff]  ;;  %v134_v58 = vld [vmem:[#allocation5 + $0x70] sm:$0xff]  ;;  %v124_v60 = vld [vmem:[#allocation5 + $0x20] sm:$0xff] }
  0x2c   :  { %197 = vmatprep.subr.mxu0 %v148_v36  ;;  %421 = vmatprep.subr.mxu1 %v152_v40  ;;  %v126_v59 = vld [vmem:[#allocation5 + $0x30] sm:$0xff]  ;;  %v131_v61 = vld [vmem:[#allocation5 + $0x58] sm:$0xff]  ;;  %v121_v63 = vld [vmem:[#allocation5 + $0x8] sm:$0xff] }
  0x2d   :  { %198 = vmatpush1.msra.mxu0 %v147_v38  ;;  %422 = vmatpush3.msra.mxu1 %v152_v40  ;;  %v123_v62 = vld [vmem:[#allocation5 + $0x18] sm:$0xff]  ;;  %v122_v4 = vld [vmem:[#allocation5 + $0x10] sm:$0xff] }
  0x2e   :  { %199 = vmatprep.subr.mxu0 %v145_v39  ;;  %423 = vmatprep.subr.mxu1 %v149_v43  ;;  %v168_v39 = vld [vmem:[%s615_s2] sm:$0x7]  ;;  %s538_s2 = smov [#allocation7]  }
  0x2f   :  { %200 = vmatpush1.msra.mxu0 %v144_v41  ;;  %424 = vmatpush3.msra.mxu1 %v149_v43  ;;  %s376_s9 = sshll.u32 %s538_s2, 4  ;;  %s377_s9 = int_to_ptr.vmem [resolvable:$true] %s376_s9 }
  0x30   :  { %201 = vmatprep.subr.mxu0 %v142_v42  ;;  %425 = vmatprep.subr.mxu1 %v146_v46  ;;  %s505_s10 = scalar_lea.vmem %s377_s9, 1536  ;;  %p510_p11 = scmp.lt.s32.totalorder %s377_s9, %s377_s9 }
  0x31   :  { %202 = vmatpush1.msra.mxu0 %v141_v44  ;;  %426 = vmatpush3.msra.mxu1 %v146_v46  ;;  %p506_p10 = scmp.ne.s32.totalorder %s377_s9, %s505_s10  ;;  %p511_p12 = scmp.lt.s32.totalorder %s505_s10, %s505_s10 }
  0x32   :  { %203 = vmatprep.subr.mxu0 %v139_v45  ;;  %427 = vmatprep.subr.mxu1 %v143_v49 }
  0x33   :  { %204 = vmatpush1.msra.mxu0 %v138_v47  ;;  %428 = vmatpush3.msra.mxu1 %v143_v49  ;;  %p512_p13 = por %p511_p12, %p510_p11 }
  0x34   :  { %205 = vmatprep.subr.mxu0 %v136_v48  ;;  %429 = vmatprep.subr.mxu1 %v140_v52 }
  0x35   :  { %206 = vmatpush1.msra.mxu0 %v135_v50  ;;  %430 = vmatpush3.msra.mxu1 %v140_v52  ;;  %p513_p0 = pnand %p512_p13, %p506_p10 }
  0x36   :  { %207 = vmatprep.subr.mxu0 %v133_v51  ;;  %431 = vmatprep.subr.mxu1 %v137_v55 }
  0x37   :  { %208 = vmatpush1.msra.mxu0 %v132_v53  ;;  %432 = vmatpush3.msra.mxu1 %v137_v55 }
  0x38   :  { %209 = vmatprep.subr.mxu0 %v130_v54  ;;  %433 = vmatprep.subr.mxu1 %v134_v58 }
  0x39   :  { %210 = vmatpush1.msra.mxu0 %v129_v56  ;;  %434 = vmatpush3.msra.mxu1 %v134_v58 }
  0x3a   :  { %211 = vmatprep.subr.mxu0 %v127_v57  ;;  %435 = vmatprep.subr.mxu1 %v131_v61 }
  0x3b   :  { %212 = vmatpush1.msra.mxu0 %v126_v59  ;;  %436 = vmatpush3.msra.mxu1 %v131_v61 }
  0x3c   :  { %213 = vmatprep.subr.mxu0 %v124_v60 }
  0x3d   :  { %214 = vmatpush1.msra.mxu0 %v123_v62 }
  0x3e   :  { %215 = vmatprep.subr.mxu0 %v121_v63 }
  0xa7   :  { %v54_v14 = vpop.xlane.xlu0 %53  ;;  %v58_v15 = vpop.xlane.xlu1 %57 }
  0xa8   :  { %v62_v16 = vmul.f32 0.0078125, %v54_v14  ;;  %v64_v17 = vmul.f32 0.0078125, %v58_v15 }
  0xaa   :  { %v578_v18 = vsub.f32 %v49_v0, %v62_v16  ;;  %v580_v19 = vsub.f32 %v51_v1, %v64_v17  ;;  %v128_v0 = vld [vmem:[#allocation5 + $0x40] sm:$0xff] }
  0xab   :  { %v56_v20 = vpop.xlane.xlu0 %55  ;;  %v60_v21 = vpop.xlane.xlu1 %59  ;;  %v120_v1 = vld [vmem:[#allocation5] sm:$0xff]  ;;  %437 = vmatprep.subr.mxu1 %v128_v0 }
  0xac   :  { %v63_v22 = vmul.f32 0.0078125, %v56_v20  ;;  %v70_v23 = vmul.f32 %v578_v18, %v578_v18  ;;  %v65_v24 = vmul.f32 0.0078125, %v60_v21  ;;  %v72_v27 = vmul.f32 %v580_v19, %v580_v19  ;;  %216 = vmatpush1.msra.mxu0 %v120_v1  ;;  %438 = vmatpush3.msra.mxu1 %v128_v0  ;;  %v389_v20 = vld [vmem:[%s616_s3] ss:$0 sm:$0xff] }
  0xae   :  { %v584_v25 = vsub.f32 %v50_v2, %v63_v22  ;;  %74 = vadd.xlane.f32.xlu0 %v70_v23  ;;  %v586_v26 = vsub.f32 %v52_v3, %v65_v24  ;;  %v537_v2 = vmov 0.0   ;;  %v125_v3 = vld [vmem:[#allocation5 + $0x28] sm:$0xff]  ;;  %v390_v22 = vld [vmem:[%s617_s4] ss:$0 sm:$0xff] }
  0xaf   :  { %249 = vmatprep.mubr.f32.mxu0 %v537_v2  ;;  %439 = vmatprep.subr.mxu1 %v125_v3 }
  0xb0   :  { %v71_v28 = vmul.f32 %v584_v25, %v584_v25  ;;  %v73_v29 = vmul.f32 %v586_v26, %v586_v26  ;;  %440 = vmatpush3.msra.mxu1 %v125_v3 }
  0xb1   :  { %441 = vmatprep.subr.mxu1 %v122_v4 }
  0xb2   :  { %78 = vadd.xlane.f32.xlu0 %v72_v27  ;;  %76 = vadd.xlane.f32.xlu1 %v71_v28 }
  0xb3   :  { %442 = vmatpush3.msra.mxu1 %v122_v4 }
  0xb6   :  { %80 = vadd.xlane.f32.xlu1 %v73_v29 }
 0x137   :  { %v75_v5 = vpop.xlane.xlu0 %74 }
 0x138   :  { %v82_v6 = vmul.f32 0.0078125, %v75_v5 }
 0x13a   :  { %v86_v7 = vadd.f32 1e-05, %v82_v6 }
 0x13b   :  { %v77_v8 = vpop.xlane.xlu1 %76  ;;  %v79_v9 = vpop.xlane.xlu0 %78 }
 0x13c   :  { %457 = vrsqrt.f32 %v86_v7  ;;  %v83_v10 = vmul.f32 0.0078125, %v77_v8  ;;  %v84_v11 = vmul.f32 0.0078125, %v79_v9 }
 0x13e   :  { %v87_v12 = vadd.f32 1e-05, %v83_v10  ;;  %v88_v13 = vadd.f32 1e-05, %v84_v11 }
 0x13f   :  { %v81_v14 = vpop.xlane.xlu1 %80 }
 0x140   :  { %459 = vrsqrt.f32 %v87_v12  ;;  %v85_v15 = vmul.f32 0.0078125, %v81_v14 }
 0x141   :  { %461 = vrsqrt.f32 %v88_v13 }
 0x142   :  { %v89_v16 = vadd.f32 1e-05, %v85_v15 }
 0x144   :  { %463 = vrsqrt.f32 %v89_v16 }
 0x149   :  { %v458_v17 = vpop.eup %457 }
 0x14a   :  { %v94_v21 = vmul.f32 %v458_v17, %v578_v18 }
 0x14c   :  { %v105_v23 = vmul.f32 %v389_v20, %v94_v21 }
 0x14d   :  { %v460_v24 = vpop.eup %459 }
 0x14e   :  { %v462_v27 = vpop.eup %461  ;;  %v116_v28 = vadd.f32 %v390_v22, %v105_v23  ;;  %v95_v29 = vmul.f32 %v460_v24, %v584_v25 }
 0x14f   :  { %v96_v30 = vmul.f32 %v462_v27, %v580_v19  ;;  %v170_v19 = vlaneseq }
 0x150   :  { %250 = vmatmul.mubr.f32.vlgmr.msra.gmra.mxu0 %v116_v28  ;;  %443 = vmatprep.mubr.f32.mxu1 %v116_v28  ;;  %v106_v31 = vmul.f32 %v389_v20, %v95_v29 }
 0x151   :  { %v464_v32 = vpop.eup %463  ;;  %255 = vmatprep.mubr.f32.mxu0 %v537_v2  ;;  %v107_v33 = vmul.f32 %v389_v20, %v96_v30  ;;  %v171_v25 = vshrl.u32 %v170_v19, 7 }
 0x152   :  { %v117_v34 = vadd.f32 %v390_v22, %v106_v31  ;;  %v97_v18 = vmul.f32 %v464_v32, %v586_v26 }
 0x153   :  { %v118_v35 = vadd.f32 %v390_v22, %v107_v33  ;;  %v172_v38 = vsub.s32 0, %v171_v25  ;;  %v176_v40 = vsub.s32 1, %v171_v25  ;;  %v180_v41 = vsub.s32 2, %v171_v25 }
 0x154   :  { %256 = vmatmul.mubr.f32.gmra.mxu0 %v117_v34  ;;  %444 = vmatmul.mubr.f32.vlgmr.msra.gmra.mxu1 %v117_v34  ;;  %v108_v36 = vmul.f32 %v389_v20, %v97_v18 }
 0x155   :  { %446 = vmatprep.mubr.f32.mxu1 %v118_v35  ;;  %261 = vmatprep.mubr.f32.mxu0 %v537_v2  ;;  %v173_v26 = vrot.slane %v168_v39, %v172_v38  ;;  %v177_v42 = vrot.slane %v168_v39, %v176_v40  ;;  %v181_v45 = vrot.slane %v168_v39, %v180_v41 }
 0x156   :  { %v119_v37 = vadd.f32 %v390_v22, %v108_v36 }
 0x158   :  { %262 = vmatmul.mubr.f32.gmra.mxu0 %v118_v35  ;;  %447 = vmatmul.mubr.f32.gmra.mxu1 %v119_v37 }
 0x159   :  { %267 = vmatprep.mubr.f32.mxu0 %v537_v2 }
 0x15c   :  { %268 = vmatmul.mubr.f32.gmra.mxu0 %v119_v37 }
 0x210   :  { %v251_v43 = vpop.f32.mrf.mxu0 }
 0x211   :  { %v252_v44 = vadd.f32 %v251_v43, %v173_v26 }
 0x212   :  { %v253_v46 = vpop.f32.mrf.mxu0 }
 0x213   :  { %359 = vst [vmem:[#allocation7] sm:$0xff] %v252_v44  ;;  %v254_v47 = vadd.f32 %v253_v46, %v177_v42 }
 0x214   :  { %v257_v48 = vpop.f32.mrf.mxu0  ;;  %v445_v49 = vpop.f32.mrf.mxu1 }
 0x215   :  { %360 = vst [vmem:[#allocation7 + $0x8] sm:$0xff] %v254_v47  ;;  %v258_v50 = vadd.f32 %v257_v48, %v173_v26  ;;  %v346_v51 = vadd.f32 %v445_v49, %v181_v45 }
 0x216   :  { %v259_v52 = vpop.f32.mrf.mxu0  ;;  %v340_v53 = vpop.f32.mrf.mxu1 }
 0x217   :  { %362 = vst [vmem:[#allocation7 + $0x18] sm:$0xff] %v258_v50  ;;  %364 = vst [vmem:[#allocation7 + $0x28] sm:$0xff] %v346_v51  ;;  %v260_v54 = vadd.f32 %v259_v52, %v177_v42  ;;  %v341_v55 = vadd.f32 %v340_v53, %v181_v45 }
 0x218   :  { %v263_v56 = vpop.f32.mrf.mxu0  ;;  %v448_v57 = vpop.f32.mrf.mxu1 }
 0x219   :  { %363 = vst [vmem:[#allocation7 + $0x20] sm:$0xff] %v260_v54  ;;  %361 = vst [vmem:[#allocation7 + $0x10] sm:$0xff] %v341_v55  ;;  %v264_v58 = vadd.f32 %v263_v56, %v173_v26  ;;  %v356_v59 = vadd.f32 %v448_v57, %v181_v45 }
 0x21a   :  { %v265_v60 = vpop.f32.mrf.mxu0  ;;  %v350_v61 = vpop.f32.mrf.mxu1 }
 0x21b   :  { %365 = vst [vmem:[#allocation7 + $0x30] sm:$0xff] %v264_v58  ;;  %370 = vst [vmem:[#allocation7 + $0x58] sm:$0xff] %v356_v59  ;;  %v266_v62 = vadd.f32 %v265_v60, %v177_v42  ;;  %v351_v63 = vadd.f32 %v350_v61, %v181_v45 }
 0x21c   :  { %v269_v0 = vpop.f32.mrf.mxu0 }
 0x21d   :  { %366 = vst [vmem:[#allocation7 + $0x38] sm:$0xff] %v266_v62  ;;  %367 = vst [vmem:[#allocation7 + $0x40] sm:$0xff] %v351_v63  ;;  %v270_v1 = vadd.f32 %v269_v0, %v173_v26 }
 0x21e   :  { %v271_v2 = vpop.f32.mrf.mxu0 }
 0x21f   :  { %368 = vst [vmem:[#allocation7 + $0x48] sm:$0xff] %v270_v1  ;;  %v272_v3 = vadd.f32 %v271_v2, %v177_v42 }
 0x221   :  { %369 = vst [vmem:[#allocation7 + $0x50] sm:$0xff] %v272_v3 }
 0x222   :  { %516 = shalt.err (!%p513_p0)
}
 0x223   :  { %382 = dma.vmem_to_hbm [thread:$0]  %s377_s9, 1536, %s618_s5, [#allocation4], %s535_s28, %s535_s28, %s536_s29  }
 0x224   :  { %529 = dma.done.wait [#allocation4], 1536  }
 0x225   :  { %530 = vsyncadd [#allocation4], 4294965760 }
 0x226   :  { %386 = vsyncpa [#allocation3], 1 }
 0x227   :  { %387 = vsyncpa [#allocation6], 1 }
 0x228   :  { %388 = vsyncpa [#allocation4], 1 }

</bundles_post_ra>
